<compile_context>
chip_gen: v5e
topology: v5e:2x2
jax: 0.10.0
libtpu: 0.0.40
codegen_flags: <defaults>
</compile_context>

<pallas_src>
import functools

import jax
import jax.numpy as jnp
from jax.experimental import pallas as pl
from jax.experimental.pallas import tpu as pltpu


def _conv_relu_kernel(x_ref, w_ref, b_ref, o_ref, patch_ref, *, kh, kw, wp):
    # x_ref    : (1, Cin, L)            flattened zero-padded image (row stride Wp)
    # w_ref    : (Cout, kh*kw*Cin)      weight, tap-major / channel-minor
    # b_ref    : (Cout, 1)              bias
    # o_ref    : (1, Cout, Hout*Wp)     lane-dense output (Wp-wide rows)
    # patch_ref: (kh*kw*Cin, Hout*Wp)   VMEM scratch: im2col patch matrix
    cin = x_ref.shape[1]
    hwp = o_ref.shape[2]

    # --- im2col: tap (dh, dw) == flat image shifted by dh*Wp + dw -------------
    for dh in range(kh):
        for dw in range(kw):
            t = dh * kw + dw
            off = dh * wp + dw
            patch_ref[t * cin:(t + 1) * cin, :] = x_ref[0, :, off:off + hwp]

    # --- single MXU matmul, f32 accumulate, fused bias + ReLU -----------------
    acc = jnp.dot(w_ref[...], patch_ref[...],
                  preferred_element_type=jnp.float32)
    acc = jnp.maximum(acc + b_ref[...], 0.0)          # (Cout,1) broadcasts on lanes
    o_ref[...] = acc[None, :, :].astype(o_ref.dtype)


def conv_relu(x_nchw, weight, bias, *, stride=1, pad=1):
    """ConvReLU forward.  x_nchw: (N, Cin, H, W), weight: (Cout, Cin, KH, KW),
    bias: (Cout,).  Returns (N, Cout, H_out, W_out) like nn.Conv2d + ReLU."""
    assert stride == 1, "kernel specialized to the module defaults (stride=1)"
    N, Cin, H, W = x_nchw.shape
    Cout, Cin_w, KH, KW = weight.shape
    assert Cin == Cin_w

    Hp, Wp = H + 2 * pad, W + 2 * pad
    H_out, W_out = Hp - KH + 1, Wp - KW + 1
    K = KH * KW * Cin
    HWp = H_out * Wp                      # flat (Wp-wide) output length per channel
    L = (Hp + 1) * Wp                     # one spare zero row keeps all 9 shifted
                                          # flat windows in-bounds

    # --- wrapper glue (cheap): spatial zero-pad + row-major flatten -----------
    # (no layout transposes; the reshape is a free contiguous reinterpretation)
    x_pad = jnp.pad(x_nchw, ((0, 0), (0, 0), (pad, pad + 1), (pad, pad)))
    x_flat = x_pad.reshape(N, Cin, L)

    # weight -> (Cout, KH*KW*Cin), k-index = (dh*KW + dw)*Cin + ci
    w_mat = jnp.transpose(weight, (0, 2, 3, 1)).reshape(Cout, K)
    b2 = bias.reshape(Cout, 1)

    kernel = functools.partial(_conv_relu_kernel, kh=KH, kw=KW, wp=Wp)

    out_flat = pl.pallas_call(
        kernel,
        out_shape=jax.ShapeDtypeStruct((N, Cout, HWp), x_nchw.dtype),
        grid_spec=pltpu.PrefetchScalarGridSpec(
            num_scalar_prefetch=0,
            grid=(N,),
            in_specs=[
                pl.BlockSpec((1, Cin, L), lambda n: (n, 0, 0)),
                pl.BlockSpec((Cout, K), lambda n: (0, 0)),
                pl.BlockSpec((Cout, 1), lambda n: (0, 0)),
            ],
            out_specs=pl.BlockSpec((1, Cout, HWp), lambda n: (n, 0, 0)),
            scratch_shapes=[
                pltpu.VMEM((K, HWp), x_nchw.dtype),   # im2col patch matrix
            ],
        ),
        compiler_params=pltpu.CompilerParams(
            dimension_semantics=("parallel",)),
    )(x_flat, w_mat, b2)

    # drop the (KW-1) garbage columns per row; reshape is free, slice is tiny.
    out = out_flat.reshape(N, Cout, H_out, Wp)[:, :, :, :W_out]
    return out


def _reference(x_nchw, weight, bias, *, stride=1, pad=1):
    out = jax.lax.conv_general_dilated(
        x_nchw, weight,
        window_strides=(stride, stride),
        padding=[(pad, pad), (pad, pad)],
        dimension_numbers=("NCHW", "OIHW", "NCHW"),
    )
    out = out + bias.reshape(1, -1, 1, 1)
    return jnp.maximum(out, 0.0)


if __name__ == "__main__":
    # Module config: ConvReLU(in_channels=4, out_channels=8, kernel_size=3,
    #                         stride=1, pad=1)
    N, Cin, H, W = 2, 4, 16, 16
    Cout, KH, KW = 8, 3, 3

    key = jax.random.PRNGKey(0)
    kx, kw, kb = jax.random.split(key, 3)

    x = jax.random.normal(kx, (N, Cin, H, W), dtype=jnp.float32)
    fan_in = Cin * KH * KW
    bound = 1.0 / jnp.sqrt(fan_in)
    weight = jax.random.uniform(kw, (Cout, Cin, KH, KW),
                                minval=-bound, maxval=bound,
                                dtype=jnp.float32)
    bias = jax.random.uniform(kb, (Cout,), minval=-bound, maxval=bound,
                              dtype=jnp.float32)

    out = jax.jit(conv_relu)(x, weight, bias)
    out = jax.block_until_ready(out)

    ref = _reference(x, weight, bias)
    assert out.shape == (N, Cout, H, W), out.shape
    assert jnp.allclose(out, ref, atol=1e-5, rtol=1e-5), "mismatch vs reference"

    print("KERNEL_OK")
</pallas_src>

<mosaic_0001>
module attributes {stable_mosaic.version = 11 : i64} {
  func.func @_conv_relu_kernel(%arg0: i32, %arg1: memref<1x4x342xf32, #tpu.memory_space<vmem>>, %arg2: memref<8x36xf32, #tpu.memory_space<vmem>>, %arg3: memref<8x1xf32, #tpu.memory_space<vmem>>, %arg4: memref<1x8x288xf32, #tpu.memory_space<vmem>>, %arg5: memref<36x288xf32, #tpu.memory_space<vmem>>) attributes {dimension_semantics = [#tpu.dimension_semantics<parallel>], iteration_bounds = array<i64: 2>, scalar_prefetch = 0 : i64, scratch_operands = 1 : i64, tpu.core_type = #tpu.core_type<tc>, window_params = [{transform_indices = @transform_0, window_bounds = array<i64: 1, 4, 342>}, {pipeline_mode = #tpu.pipeline_mode<synchronous>, transform_indices = @transform_1, window_bounds = array<i64: 8, 36>}, {pipeline_mode = #tpu.pipeline_mode<synchronous>, transform_indices = @transform_2, window_bounds = array<i64: 8, 1>}, {transform_indices = @transform_3, window_bounds = array<i64: 1, 8, 288>}]} {
    %c0 = arith.constant 0 : index
    %c0_0 = arith.constant 0 : index
    %c0_1 = arith.constant 0 : index
    %0 = vector.load %arg1[%c0, %c0_0, %c0_1] : memref<1x4x342xf32, #tpu.memory_space<vmem>>, vector<1x4x288xf32>
    %1 = vector.shape_cast %0 : vector<1x4x288xf32> to vector<4x288xf32>
    %c0_2 = arith.constant 0 : index
    %c0_3 = arith.constant 0 : index
    %2 = vector.load %arg5[%c0_2, %c0_3] : memref<36x288xf32, #tpu.memory_space<vmem>>, vector<4x288xf32>
    tpu.vector_store %arg5[%c0_2, %c0_3], %1 {strides = array<i32>} : memref<36x288xf32, #tpu.memory_space<vmem>>, vector<4x288xf32>,
    %c0_4 = arith.constant 0 : index
    %c0_5 = arith.constant 0 : index
    %c1 = arith.constant 1 : index
    %3 = vector.load %arg1[%c0_4, %c0_5, %c1] : memref<1x4x342xf32, #tpu.memory_space<vmem>>, vector<1x4x288xf32>
    %4 = vector.shape_cast %3 : vector<1x4x288xf32> to vector<4x288xf32>
    %c4 = arith.constant 4 : index
    %c0_6 = arith.constant 0 : index
    %5 = vector.load %arg5[%c4, %c0_6] : memref<36x288xf32, #tpu.memory_space<vmem>>, vector<4x288xf32>
    tpu.vector_store %arg5[%c4, %c0_6], %4 {strides = array<i32>} : memref<36x288xf32, #tpu.memory_space<vmem>>, vector<4x288xf32>,
    %c0_7 = arith.constant 0 : index
    %c0_8 = arith.constant 0 : index
    %c2 = arith.constant 2 : index
    %6 = vector.load %arg1[%c0_7, %c0_8, %c2] : memref<1x4x342xf32, #tpu.memory_space<vmem>>, vector<1x4x288xf32>
    %7 = vector.shape_cast %6 : vector<1x4x288xf32> to vector<4x288xf32>
    %c8 = arith.constant 8 : index
    %c0_9 = arith.constant 0 : index
    %8 = vector.load %arg5[%c8, %c0_9] : memref<36x288xf32, #tpu.memory_space<vmem>>, vector<4x288xf32>
    tpu.vector_store %arg5[%c8, %c0_9], %7 {strides = array<i32>} : memref<36x288xf32, #tpu.memory_space<vmem>>, vector<4x288xf32>,
    %c0_10 = arith.constant 0 : index
    %c0_11 = arith.constant 0 : index
    %c18 = arith.constant 18 : index
    %9 = vector.load %arg1[%c0_10, %c0_11, %c18] : memref<1x4x342xf32, #tpu.memory_space<vmem>>, vector<1x4x288xf32>
    %10 = vector.shape_cast %9 : vector<1x4x288xf32> to vector<4x288xf32>
    %c12 = arith.constant 12 : index
    %c0_12 = arith.constant 0 : index
    %11 = vector.load %arg5[%c12, %c0_12] : memref<36x288xf32, #tpu.memory_space<vmem>>, vector<4x288xf32>
    tpu.vector_store %arg5[%c12, %c0_12], %10 {strides = array<i32>} : memref<36x288xf32, #tpu.memory_space<vmem>>, vector<4x288xf32>,
    %c0_13 = arith.constant 0 : index
    %c0_14 = arith.constant 0 : index
    %c19 = arith.constant 19 : index
    %12 = vector.load %arg1[%c0_13, %c0_14, %c19] : memref<1x4x342xf32, #tpu.memory_space<vmem>>, vector<1x4x288xf32>
    %13 = vector.shape_cast %12 : vector<1x4x288xf32> to vector<4x288xf32>
    %c16 = arith.constant 16 : index
    %c0_15 = arith.constant 0 : index
    %14 = vector.load %arg5[%c16, %c0_15] : memref<36x288xf32, #tpu.memory_space<vmem>>, vector<4x288xf32>
    tpu.vector_store %arg5[%c16, %c0_15], %13 {strides = array<i32>} : memref<36x288xf32, #tpu.memory_space<vmem>>, vector<4x288xf32>,
    %c0_16 = arith.constant 0 : index
    %c0_17 = arith.constant 0 : index
    %c20 = arith.constant 20 : index
    %15 = vector.load %arg1[%c0_16, %c0_17, %c20] : memref<1x4x342xf32, #tpu.memory_space<vmem>>, vector<1x4x288xf32>
    %16 = vector.shape_cast %15 : vector<1x4x288xf32> to vector<4x288xf32>
    %c20_18 = arith.constant 20 : index
    %c0_19 = arith.constant 0 : index
    %17 = vector.load %arg5[%c20_18, %c0_19] : memref<36x288xf32, #tpu.memory_space<vmem>>, vector<4x288xf32>
    tpu.vector_store %arg5[%c20_18, %c0_19], %16 {strides = array<i32>} : memref<36x288xf32, #tpu.memory_space<vmem>>, vector<4x288xf32>,
    %c0_20 = arith.constant 0 : index
    %c0_21 = arith.constant 0 : index
    %c36 = arith.constant 36 : index
    %18 = vector.load %arg1[%c0_20, %c0_21, %c36] : memref<1x4x342xf32, #tpu.memory_space<vmem>>, vector<1x4x288xf32>
    %19 = vector.shape_cast %18 : vector<1x4x288xf32> to vector<4x288xf32>
    %c24 = arith.constant 24 : index
    %c0_22 = arith.constant 0 : index
    %20 = vector.load %arg5[%c24, %c0_22] : memref<36x288xf32, #tpu.memory_space<vmem>>, vector<4x288xf32>
    tpu.vector_store %arg5[%c24, %c0_22], %19 {strides = array<i32>} : memref<36x288xf32, #tpu.memory_space<vmem>>, vector<4x288xf32>,
    %c0_23 = arith.constant 0 : index
    %c0_24 = arith.constant 0 : index
    %c37 = arith.constant 37 : index
    %21 = vector.load %arg1[%c0_23, %c0_24, %c37] : memref<1x4x342xf32, #tpu.memory_space<vmem>>, vector<1x4x288xf32>
    %22 = vector.shape_cast %21 : vector<1x4x288xf32> to vector<4x288xf32>
    %c28 = arith.constant 28 : index
    %c0_25 = arith.constant 0 : index
    %23 = vector.load %arg5[%c28, %c0_25] : memref<36x288xf32, #tpu.memory_space<vmem>>, vector<4x288xf32>
    tpu.vector_store %arg5[%c28, %c0_25], %22 {strides = array<i32>} : memref<36x288xf32, #tpu.memory_space<vmem>>, vector<4x288xf32>,
    %c0_26 = arith.constant 0 : index
    %c0_27 = arith.constant 0 : index
    %c38 = arith.constant 38 : index
    %24 = vector.load %arg1[%c0_26, %c0_27, %c38] : memref<1x4x342xf32, #tpu.memory_space<vmem>>, vector<1x4x288xf32>
    %25 = vector.shape_cast %24 : vector<1x4x288xf32> to vector<4x288xf32>
    %c32 = arith.constant 32 : index
    %c0_28 = arith.constant 0 : index
    %26 = vector.load %arg5[%c32, %c0_28] : memref<36x288xf32, #tpu.memory_space<vmem>>, vector<4x288xf32>
    tpu.vector_store %arg5[%c32, %c0_28], %25 {strides = array<i32>} : memref<36x288xf32, #tpu.memory_space<vmem>>, vector<4x288xf32>,
    %c0_29 = arith.constant 0 : index
    %c0_30 = arith.constant 0 : index
    %27 = vector.load %arg2[%c0_29, %c0_30] : memref<8x36xf32, #tpu.memory_space<vmem>>, vector<8x36xf32>
    %c0_31 = arith.constant 0 : index
    %c0_32 = arith.constant 0 : index
    %28 = vector.load %arg5[%c0_31, %c0_32] : memref<36x288xf32, #tpu.memory_space<vmem>>, vector<36x288xf32>
    %cst = arith.constant dense<0.000000e+00> : vector<8x288xf32>
    %29 = tpu.matmul %27, %28, %cst {dimension_numbers = #tpu.dot_dimension_numbers<[1], [0], [0], [1], [0, 0, 1, 1], [], []>} : vector<8x36xf32>, vector<36x288xf32>, vector<8x288xf32> -> vector<8x288xf32>
    %c0_33 = arith.constant 0 : index
    %c0_34 = arith.constant 0 : index
    %30 = vector.load %arg3[%c0_33, %c0_34] : memref<8x1xf32, #tpu.memory_space<vmem>>, vector<8x1xf32>
    %31 = vector.broadcast %30 : vector<8x1xf32> to vector<8x288xf32>
    %32 = arith.addf %29, %31 : vector<8x288xf32>
    %cst_35 = arith.constant 0.000000e+00 : f32
    %33 = vector.broadcast %cst_35 : f32 to vector<8x288xf32>
    %34 = arith.maximumf %32, %33 : vector<8x288xf32>
    %35 = vector.shape_cast %34 : vector<8x288xf32> to vector<1x8x288xf32>
    %c0_36 = arith.constant 0 : index
    %c0_37 = arith.constant 0 : index
    %c0_38 = arith.constant 0 : index
    %36 = vector.load %arg4[%c0_36, %c0_37, %c0_38] : memref<1x8x288xf32, #tpu.memory_space<vmem>>, vector<1x8x288xf32>
    tpu.vector_store %arg4[%c0_36, %c0_37, %c0_38], %35 {strides = array<i32>} : memref<1x8x288xf32, #tpu.memory_space<vmem>>, vector<1x8x288xf32>,
    return
  }
  func.func @transform_0(%arg0: i32) -> (i32, i32, i32) {
    %c0_i32 = arith.constant 0 : i32
    %c0_i32_0 = arith.constant 0 : i32
    %c0_i32_1 = arith.constant 0 : i32
    return %arg0, %c0_i32, %c0_i32_0 : i32, i32, i32
  }
  func.func @transform_1(%arg0: i32) -> (i32, i32) {
    %c0_i32 = arith.constant 0 : i32
    %c0_i32_0 = arith.constant 0 : i32
    %c0_i32_1 = arith.constant 0 : i32
    return %c0_i32, %c0_i32_0 : i32, i32
  }
  func.func @transform_2(%arg0: i32) -> (i32, i32) {
    %c0_i32 = arith.constant 0 : i32
    %c0_i32_0 = arith.constant 0 : i32
    %c0_i32_1 = arith.constant 0 : i32
    return %c0_i32, %c0_i32_0 : i32, i32
  }
  func.func @transform_3(%arg0: i32) -> (i32, i32, i32) {
    %c0_i32 = arith.constant 0 : i32
    %c0_i32_0 = arith.constant 0 : i32
    %c0_i32_1 = arith.constant 0 : i32
    return %arg0, %c0_i32, %c0_i32_0 : i32, i32, i32
  }
}

</mosaic_0001>

<bundles_post_ra>
// kernel: conv_relu.1
= control target key start
LH: loop header
LB: loop body
LE: loop exit
PB: predicated region body
PF: predicated region fallthrough
CT: control target
= control target key end

     0   :  { %s623_s12 = smov 0   ;;  %s717_s0 = inlined_call_operand.vmem [shape: f32[2,4,342], index: 0, kind: input, shape index: {}]   ;;  %s718_s1 = inlined_call_operand.vmem [shape: f32[8,36], index: 1, kind: input, shape index: {}]   ;;  %s719_s2 = inlined_call_operand.vmem [shape: f32[8,1], index: 2, kind: input, shape index: {}]   ;;  %s720_s3 = inlined_call_operand.vmem [shape: f32[2,8,288], index: 3, kind: output, shape index: {}]  }
   0x1 LB: > { %s551_s13 = sadd.s32 4294967295, %s592_s12   ;;  %p555_p0 = scmp.ge.s32.totalorder %s592_s12, 1  ;;  %s592_s12 = sphi %s623_s12, %s13_s12  }
   0x2   : > { %p137_p1 = scmp.lt.s32.totalorder %s592_s12, 3 }
   0x4   : > { %p138_p2 = pnand %p555_p0, %p137_p1 }
   0x5   : > { %p161_p3 = scmp.lt.s32.totalorder (!%p138_p2), %s551_s13, 1  ;;  %s594_s18 = smov (!%p138_p2), 127  }
   0x6   : > { %141 = sbr.rel (%p138_p2) target bundleno = 371 (0x173), region = 32  ;;  %s595_s19 = smov (!%p138_p2), 126  }
   0x7   : > { %s596_s20 = smov (!%p138_p2), 110   ;;  %s597_s21 = smov (!%p138_p2), 109  }
   0x8   : > { %s598_s22 = smov (!%p138_p2), 108   ;;  %s599_s23 = smov (!%p138_p2), 92  }
   0x9   : > { %s600_s24 = smov (!%p138_p2), 91   ;;  %s601_s25 = smov (!%p138_p2), 90  }
   0xb   : > { %s722_s13 = smov (!%p161_p3, %s551_s13), 1  ;;  %vm186_vm0 = vcmask 257024   ;;  %vm213_vm1 = vcmask 261124   ;;  %vm308_vm2 = vcmask 883712   ;;  %vm282_vm3 = vcmask 891904  }
   0xc   : > { %s566_s14 = smul.u32 12, %s722_s13  ;;  %vm333_vm4 = vcmask 752640   ;;  %vm205_vm5 = vcmask 1039360   ;;  %vm359_vm6 = vcmask 744448   ;;  %vm231_vm7 = vcmask 1031168  }
   0xd   : > { %vm384_vm8 = vcmask 736256   ;;  %vm419_vm9 = vcmask 1043456   ;;  %vm257_vm10 = vcmask 900096   ;;  %vm415_vm11 = vcmask 293888   ;;  %s567_s30 = smul.u32 24, %s722_s13 }
   0xe   : > { %s637_s17 = scalar_lea.vmem %s717_s0, %s566_s14  ;;  %vm494_vm12 = vcmask 261120  }
   0xf   : > { %v172_v0 = vld [vmem:[%s637_s17 + $0x8] sm:$0xf]  ;;  %v641_v1 = vld [vmem:[%s637_s17] sm:$0xff]  ;;  %s170_s6 = scalar_lea.vmem %s720_s3, %s567_s30 }
  0x10   : > { %177 = vst [vmem:[#allocation1 + $0x10] ss:$2 sm:$0xff] %v172_v0  ;;  %v189_v2 = vld [vmem:[%s637_s17 + $0x8] sm:$0xf] }
  0x11   : > { %175 = vst [vmem:[#allocation1] ss:$2 sm:$0xff] %v641_v1  ;;  %v216_v6 = vld [vmem:[%s637_s17 + $0x8] sm:$0xf] }
  0x12   : > { %v241_v10 = vld [vmem:[%s637_s17 + $0x8] sm:$0xf] }
  0x13   : > { %v267_v14 = vld [vmem:[%s637_s17 + $0x8] sm:$0xf] }
  0x14   : > { %v292_v18 = vld [vmem:[%s637_s17 + $0x8] sm:$0xf] }
  0x15   : > { %v318_v22 = vld [vmem:[%s637_s17 + $0x8] sm:$0xf] }
  0x16   : > { %v343_v26 = vld [vmem:[%s637_s17 + $0x8] sm:$0xf] }
  0x17   : > { %v645_v3 = vld.sshfl [vmem:[#allocation1 + $0x10] sm:$0xff pattern:$0x75316420]  ;;  %v369_v30 = vld [vmem:[%s637_s17 + $0x8] sm:$0xf] }
  0x18   : > { %195 = vst [vmem:[#allocation1 + $0x11] ss:$2 sm:$0xff] %v189_v2  ;;  %v178_v4 = vld.sshfl [vmem:[#allocation1] sm:$0xff pattern:$0x75316420] }
  0x19   : > { %v179_v5 = vld.sshfl [vmem:[#allocation1 + $0x8] sm:$0xff pattern:$0x75316420]  ;;  %184 = vst [vmem:[#allocation2] sm:$0xf] %v178_v4  ;;  %v409_v4 = vld [vmem:[%s719_s2] sm:$0xff] }
  0x1a   : > { %193 = vst [vmem:[#allocation1 + $0x1] ss:$2 sm:$0xff] %v641_v1 }
  0x1b   : > { %185 = vst [vmem:[#allocation2 + $0x8] sm:$0xf] %v179_v5  ;;  %v602_v5 = vmov 0  }
  0x1c   : > { %187 = vst.msk [vmem:[#allocation2 + $0x10] sm:$0xf] %vm186_vm0, %v645_v3  ;;  %585 = vset.pattern.permute.xlu0 %v602_v5 }
  0x1f   : > { %v198_v7 = vld.sshfl [vmem:[#allocation1 + $0x10] sm:$0xff pattern:$0x75316420] }
  0x20   : > { %203 = vrot.lane.b32.xlu1 %v198_v7, %s594_s18  ;;  %221 = vst [vmem:[#allocation1 + $0x10] ss:$2 sm:$0xff] %v216_v6 }
  0x21   : > { %v650_v8 = vld.sshfl [vmem:[#allocation1] sm:$0xff pattern:$0x75316420]  ;;  %v652_v9 = vld.sshfl [vmem:[#allocation1 + $0x8] sm:$0xff pattern:$0x75316420] }
  0x22   : > { %219 = vst [vmem:[#allocation1] ss:$2 sm:$0xff] %v641_v1 }
  0x27   : > { %v224_v11 = vld.sshfl [vmem:[#allocation1 + $0x10] sm:$0xff pattern:$0x75316420] }
  0x28   : > { %229 = vrot.lane.b32.xlu1 %v224_v11, %s595_s19  ;;  %247 = vst [vmem:[#allocation1 + $0x11] ss:$2 sm:$0xff] %v241_v10 }
  0x29   : > { %v222_v12 = vld.sshfl [vmem:[#allocation1] sm:$0xff pattern:$0x75316420]  ;;  %v223_v13 = vld.sshfl [vmem:[#allocation1 + $0x8] sm:$0xff pattern:$0x75316420] }
  0x2a   : > { %225 = vrot.lane.b32.xlu0 %v222_v12, %s595_s19  ;;  %245 = vst [vmem:[#allocation1 + $0x1] ss:$2 sm:$0xff] %v641_v1 }
  0x2f   : > { %v250_v15 = vld.sshfl [vmem:[#allocation1 + $0x10] sm:$0xff pattern:$0x75316420] }
  0x30   : > { %255 = vrot.lane.b32.xlu2 %v250_v15, %s596_s20  ;;  %272 = vst [vmem:[#allocation1 + $0x10] ss:$2 sm:$0xff] %v267_v14 }
  0x31   : > { %v248_v16 = vld.sshfl [vmem:[#allocation1] sm:$0xff pattern:$0x75316420]  ;;  %v249_v17 = vld.sshfl [vmem:[#allocation1 + $0x8] sm:$0xff pattern:$0x75316420] }
  0x32   : > { %270 = vst [vmem:[#allocation1] ss:$2 sm:$0xff] %v641_v1 }
  0x37   : > { %v275_v19 = vld.sshfl [vmem:[#allocation1 + $0x10] sm:$0xff pattern:$0x75316420] }
  0x38   : > { %280 = vrot.lane.b32.xlu1 %v275_v19, %s597_s21  ;;  %298 = vst [vmem:[#allocation1 + $0x11] ss:$2 sm:$0xff] %v292_v18 }
  0x39   : > { %v273_v20 = vld.sshfl [vmem:[#allocation1] sm:$0xff pattern:$0x75316420]  ;;  %v274_v21 = vld.sshfl [vmem:[#allocation1 + $0x8] sm:$0xff pattern:$0x75316420] }
  0x3a   : > { %276 = vrot.lane.b32.xlu2 %v273_v20, %s597_s21  ;;  %278 = vrot.lane.b32.xlu0 %v274_v21, %s597_s21  ;;  %296 = vst [vmem:[#allocation1 + $0x1] ss:$2 sm:$0xff] %v641_v1 }
  0x3f   : > { %v301_v23 = vld.sshfl [vmem:[#allocation1 + $0x10] sm:$0xff pattern:$0x75316420] }
  0x40   : > { %323 = vst [vmem:[#allocation1 + $0x10] ss:$2 sm:$0xff] %v318_v22 }
  0x41   : > { %v299_v24 = vld.sshfl [vmem:[#allocation1] sm:$0xff pattern:$0x75316420]  ;;  %v300_v25 = vld.sshfl [vmem:[#allocation1 + $0x8] sm:$0xff pattern:$0x75316420] }
  0x42   : > { %306 = vrot.lane.b32.xlu2 %v301_v23, %s598_s22  ;;  %302 = vrot.lane.b32.xlu1 %v299_v24, %s598_s22  ;;  %321 = vst [vmem:[#allocation1] ss:$2 sm:$0xff] %v641_v1 }
  0x47   : > { %v326_v27 = vld.sshfl [vmem:[#allocation1 + $0x10] sm:$0xff pattern:$0x75316420] }
  0x48   : > { %349 = vst [vmem:[#allocation1 + $0x11] ss:$2 sm:$0xff] %v343_v26  ;;  %331 = vrot.lane.b32.xlu0 %v326_v27, %s599_s23 }
  0x49   : > { %v325_v28 = vld.sshfl [vmem:[#allocation1 + $0x8] sm:$0xff pattern:$0x75316420]  ;;  %v324_v29 = vld.sshfl [vmem:[#allocation1] sm:$0xff pattern:$0x75316420] }
  0x4a   : > { %304 = vrot.lane.b32.xlu2 %v300_v25, %s598_s22  ;;  %329 = vrot.lane.b32.xlu1 %v325_v28, %s599_s23  ;;  %347 = vst [vmem:[#allocation1 + $0x1] ss:$2 sm:$0xff] %v641_v1 }
  0x4f   : > { %v352_v31 = vld.sshfl [vmem:[#allocation1 + $0x10] sm:$0xff pattern:$0x75316420] }
  0x50   : > { %374 = vst [vmem:[#allocation1 + $0x10] ss:$2 sm:$0xff] %v369_v30  ;;  %327 = vrot.lane.b32.xlu0 %v324_v29, %s599_s23 }
  0x51   : > { %v351_v32 = vld.sshfl [vmem:[#allocation1 + $0x8] sm:$0xff pattern:$0x75316420]  ;;  %v350_v33 = vld.sshfl [vmem:[#allocation1] sm:$0xff pattern:$0x75316420] }
  0x52   : > { %251 = vrot.lane.b32.xlu2 %v248_v16, %s596_s20  ;;  %357 = vrot.lane.b32.xlu1 %v352_v31, %s600_s24  ;;  %372 = vst [vmem:[#allocation1] ss:$2 sm:$0xff] %v641_v1  ;;  %v393_v16 = vld [vmem:[%s718_s1] sm:$0xff] }
  0x57   : > { %v377_v34 = vld.sshfl [vmem:[#allocation1 + $0x10] sm:$0xff pattern:$0x75316420] }
  0x58   : > { %355 = vrot.lane.b32.xlu0 %v351_v32, %s600_s24 }
  0x59   : > { %v375_v35 = vld.sshfl [vmem:[#allocation1] sm:$0xff pattern:$0x75316420]  ;;  %v376_v36 = vld.sshfl [vmem:[#allocation1 + $0x8] sm:$0xff pattern:$0x75316420] }
  0x5a   : > { %227 = vrot.lane.b32.xlu1 %v223_v13, %s595_s19  ;;  %353 = vrot.lane.b32.xlu2 %v350_v33, %s600_s24 }
  0x60   : > { %382 = vrot.lane.b32.xlu0 %v377_v34, %s601_s25 }
  0x62   : > { %378 = vrot.lane.b32.xlu2 %v375_v35, %s601_s25  ;;  %199 = vrot.lane.b32.xlu1 %v650_v8, %s594_s18 }
  0x68   : > { %380 = vrot.lane.b32.xlu0 %v376_v36, %s601_s25 }
  0x6a   : > { %201 = vrot.lane.b32.xlu2 %v652_v9, %s594_s18 }
  0x70   : > { %253 = vrot.lane.b32.xlu0 %v249_v17, %s596_s20 }
  0x78   : > { %412 = vperm.xlu0 %585, %v409_v4  }
  0x8a   : > { %v679_v37 = vpop.permute.xlu2 %255 }
  0x8b   : > { %265 = vst.msk [vmem:[#allocation2 + $0x28] sm:$0xf0] %vm213_vm1, %v679_v37 }
  0x92   : > { %v204_v38 = vpop.permute.xlu1 %203 }
  0x93   : > { %214 = vst.msk [vmem:[#allocation2 + $0x10] sm:$0xf0] %vm213_vm1, %v204_v38 }
  0x94   : > { %v277_v39 = vpop.permute.xlu2 %276 }
  0x9a   : > { %v230_v40 = vpop.permute.xlu1 %229  ;;  %v396_v18 = vld [vmem:[#allocation2 + $0x10] sm:$0xff] }
  0x9b   : > { %239 = vst.msk [vmem:[#allocation2 + $0x28] sm:$0xf] %vm186_vm0, %v230_v40 }
  0x9c   : > { %v307_v41 = vpop.permute.xlu2 %306  ;;  %v226_v42 = vpop.permute.xlu0 %225 }
  0x9d   : > { %316 = vst.msk [vmem:[#allocation2 + $0x40] sm:$0xf0] %vm213_vm1, %v307_v41 }
  0xa2   : > { %v399_v15 = vld [vmem:[#allocation2 + $0x28] sm:$0xff] }
  0xa4   : > { %v305_v43 = vpop.permute.xlu2 %304 }
  0xa5   : > { %v310_v44 = vsel %vm308_vm2, %v305_v43, %v307_v41 }
  0xa6   : > { %315 = vst [vmem:[#allocation2 + $0x38] sm:$0xf0] %v310_v44 }
  0xaa   : > { %v281_v45 = vpop.permute.xlu1 %280 }
  0xab   : > { %290 = vst.msk [vmem:[#allocation2 + $0x40] sm:$0xf] %vm186_vm0, %v281_v45 }
  0xac   : > { %v688_v46 = vpop.permute.xlu2 %251  ;;  %v279_v47 = vpop.permute.xlu0 %278 }
  0xad   : > { %v283_v48 = vsel %vm282_vm3, %v277_v39, %v279_v47  ;;  %v284_v49 = vsel %vm282_vm3, %v279_v47, %v281_v45 }
  0xae   : > { %288 = vst [vmem:[#allocation2 + $0x30] sm:$0xf] %v283_v48 }
  0xaf   : > { %289 = vst [vmem:[#allocation2 + $0x38] sm:$0xf] %v284_v49 }
  0xb2   : > { %v402_v14 = vld [vmem:[#allocation2 + $0x40] sm:$0xff] }
  0xb4   : > { %v303_v50 = vpop.permute.xlu1 %302  ;;  %v354_v51 = vpop.permute.xlu2 %353 }
  0xb5   : > { %v309_v52 = vsel %vm308_vm2, %v303_v50, %v305_v43 }
  0xb6   : > { %314 = vst [vmem:[#allocation2 + $0x30] sm:$0xf0] %v309_v52  ;;  %v401_v26 = vld [vmem:[#allocation2 + $0x38] sm:$0xff] }
  0xba   : > { %v332_v53 = vpop.permute.xlu0 %331 }
  0xbb   : > { %341 = vst.msk [vmem:[#allocation2 + $0x58] sm:$0xf] %vm186_vm0, %v332_v53 }
  0xbc   : > { %v330_v54 = vpop.permute.xlu1 %329  ;;  %v379_v55 = vpop.permute.xlu2 %378 }
  0xbd   : > { %v335_v56 = vsel %vm333_vm4, %v330_v54, %v332_v53  ;;  %v400_v25 = vld [vmem:[#allocation2 + $0x30] sm:$0xff] }
  0xbe   : > { %340 = vst [vmem:[#allocation2 + $0x50] sm:$0xf] %v335_v56 }
  0xc2   : > { %v328_v57 = vpop.permute.xlu0 %327 }
  0xc3   : > { %v334_v58 = vsel %vm333_vm4, %v328_v57, %v330_v54 }
  0xc4   : > { %v358_v59 = vpop.permute.xlu1 %357  ;;  %339 = vst [vmem:[#allocation2 + $0x48] sm:$0xf] %v334_v58  ;;  %v202_v60 = vpop.permute.xlu2 %201 }
  0xc5   : > { %367 = vst.msk [vmem:[#allocation2 + $0x58] sm:$0xf0] %vm213_vm1, %v358_v59  ;;  %v207_v61 = vsel %vm205_vm5, %v202_v60, %v204_v38 }
  0xc6   : > { %212 = vst [vmem:[#allocation2 + $0x8] sm:$0xf0] %v207_v61 }
  0xca   : > { %v356_v62 = vpop.permute.xlu0 %355 }
  0xcb   : > { %v360_v63 = vsel %vm359_vm6, %v354_v51, %v356_v62  ;;  %v361_v0 = vsel %vm359_vm6, %v356_v62, %v358_v59 }
  0xcc   : > { %v228_v1 = vpop.permute.xlu1 %227  ;;  %365 = vst [vmem:[#allocation2 + $0x48] sm:$0xf0] %v360_v63  ;;  %v405_v13 = vld [vmem:[#allocation2 + $0x58] sm:$0xff] }
  0xcd   : > { %v232_v2 = vsel %vm231_vm7, %v226_v42, %v228_v1  ;;  %v233_v3 = vsel %vm231_vm7, %v228_v1, %v230_v40  ;;  %366 = vst [vmem:[#allocation2 + $0x50] sm:$0xf0] %v361_v0  ;;  %v395_v30 = vld [vmem:[#allocation2 + $0x8] sm:$0xff] }
  0xce   : > { %237 = vst [vmem:[#allocation2 + $0x18] sm:$0xf] %v232_v2 }
  0xcf   : > { %238 = vst [vmem:[#allocation2 + $0x20] sm:$0xf] %v233_v3 }
  0xd2   : > { %v383_v6 = vpop.permute.xlu0 %382 }
  0xd3   : > { %392 = vst.msk [vmem:[#allocation2 + $0x70] sm:$0xf] %vm186_vm0, %v383_v6  ;;  %v403_v23 = vld [vmem:[#allocation2 + $0x48] sm:$0xff] }
  0xd4   : > { %v200_v7 = vpop.permute.xlu1 %199  ;;  %v404_v24 = vld [vmem:[#allocation2 + $0x50] sm:$0xff] }
  0xd5   : > { %v206_v8 = vsel %vm205_vm5, %v200_v7, %v202_v60 }
  0xd6   : > { %211 = vst [vmem:[#allocation2] sm:$0xf0] %v206_v8 }
  0xda   : > { %v381_v9 = vpop.permute.xlu0 %380  ;;  %v408_v10 = vld [vmem:[#allocation2 + $0x70] sm:$0xf] }
  0xdb   : > { %v385_v11 = vsel %vm384_vm8, %v379_v55, %v381_v9  ;;  %v386_v12 = vsel %vm384_vm8, %v381_v9, %v383_v6  ;;  %562 = vmatpush.msk.msra.mxu2 %vm419_vm9, %v408_v10 }
  0xdc   : > { %390 = vst [vmem:[#allocation2 + $0x60] sm:$0xf] %v385_v11 }
  0xdd   : > { %391 = vst [vmem:[#allocation2 + $0x68] sm:$0xf] %v386_v12  ;;  %481 = vmatpush.msra.mxu2 %v405_v13  ;;  %v394_v28 = vld [vmem:[#allocation2] sm:$0xff] }
  0xdf   : > { %482 = vmatpush.msra.mxu2 %v402_v14 }
  0xe1   : > { %483 = vmatpush.msra.mxu2 %v399_v15 }
  0xe2   : > { %v254_v17 = vpop.permute.xlu0 %253 }
  0xe3   : > { %v258_v19 = vsel %vm257_vm10, %v688_v46, %v254_v17  ;;  %v259_v20 = vsel %vm257_vm10, %v254_v17, %v679_v37  ;;  %484 = vmatpush.msra.mxu2 %v396_v18  ;;  %v406_v21 = vld [vmem:[#allocation2 + $0x60] sm:$0xf] }
  0xe4   : > { %263 = vst [vmem:[#allocation2 + $0x18] sm:$0xf0] %v258_v19  ;;  %558 = vmatpush.msk.msra.mxu0 %vm419_vm9, %v406_v21  ;;  %v407_v22 = vld [vmem:[#allocation2 + $0x68] sm:$0xf]  ;;  %563 = vmatmul.msk.f32.vlgmr.msra.gmra.mxu2 %vm415_vm11, %v393_v16 }
  0xe5   : > { %264 = vst [vmem:[#allocation2 + $0x20] sm:$0xf0] %v259_v20  ;;  %560 = vmatpush.msk.msra.mxu1 %vm419_vm9, %v407_v22 }
  0xe6   : > { %441 = vmatpush.msra.mxu0 %v403_v23 }
  0xe7   : > { %461 = vmatpush.msra.mxu1 %v404_v24 }
  0xe8   : > { %442 = vmatpush.msra.mxu0 %v400_v25 }
  0xe9   : > { %462 = vmatpush.msra.mxu1 %v401_v26 }
  0xea   : > { %v413_v31 = vpop.permute.xlu0 %412 }
  0xeb   : > { %v397_v27 = vld [vmem:[#allocation2 + $0x18] sm:$0xff] }
  0xec   : > { %443 = vmatpush.msra.mxu0 %v397_v27  ;;  %v398_v29 = vld [vmem:[#allocation2 + $0x20] sm:$0xff] }
  0xed   : > { %463 = vmatpush.msra.mxu1 %v398_v29 }
  0xee   : > { %444 = vmatpush.msra.mxu0 %v394_v28 }
  0xef   : > { %464 = vmatpush.msra.mxu1 %v395_v30  ;;  %559 = vmatmul.msk.f32.vlgmr.msra.gmra.mxu0 %vm415_vm11, %v393_v16 }
  0xf0   : > { %561 = vmatmul.msk.f32.vlgmr.msra.gmra.mxu1 %vm415_vm11, %v393_v16 }
 0x167   : > { %v486_v32 = vpop.f32.mrf.mxu2 }
 0x168   : > { %v487_v33 = vadd.f32 %v486_v32, %v413_v31 }
 0x16a   : > { %v491_v34 = vmax.f32 %v487_v33, 0.0 }
 0x16c   : > { %v446_v35 = vpop.f32.mrf.mxu0  ;;  %495 = vst.msk [vmem:[%s170_s6 + $0x10] sm:$0xff] %vm494_vm12, %v491_v34 }
 0x16d   : > { %v447_v36 = vadd.f32 %v446_v35, %v413_v31  ;;  %v466_v37 = vpop.f32.mrf.mxu1 }
 0x16e   : > { %v467_v38 = vadd.f32 %v466_v37, %v413_v31 }
 0x16f   : > { %v489_v39 = vmax.f32 %v447_v36, 0.0 }
 0x170   : > { %v490_v40 = vmax.f32 %v467_v38, 0.0 }
 0x171   : > { %492 = vst [vmem:[%s170_s6] sm:$0xff] %v489_v39 }
 0x172   : > { %493 = vst [vmem:[%s170_s6 + $0x8] sm:$0xff] %v490_v40 }
 0x173 PF: > { %s13_s12 = sadd.s32 1, %s592_s12  }
 0x174   : > { %p10_p4 = scmp.ge.s32.totalorder %s13_s12, 4  }
 0x176   :  { %12 = sbr.rel (!%p10_p4) target bundleno = 1 (0x1), region = 75 }

</bundles_post_ra>
